<compile_context>
chip_gen: v5e
topology: v5e:2x2
jax: 0.10.0
libtpu: 0.0.40
codegen_flags: <defaults>
</compile_context>

<pallas_src>
import jax
import jax.numpy as jnp
from jax.experimental import pallas as pl
from jax.experimental.pallas import tpu as pltpu


# ----------------------------- Pallas kernel --------------------------------
def _outconv_kernel(w_ref, b_ref, x_ref, o_ref):
    # w_ref : SMEM (C_out, C_in)      spectral-normalized weight (scalars)
    # b_ref : SMEM (C_out,)           bias (scalars)
    # x_ref : VMEM (1, C_in, R, 128)  dense per-channel pixel planes
    # o_ref : VMEM (1, C_out, R, 128)
    c_in = x_ref.shape[1]
    c_out = o_ref.shape[1]

    # Hoist channel-plane loads out of the output loop: C_in loads total,
    # reused across all C_out accumulations.
    x_planes = [x_ref[0, ci] for ci in range(c_in)]          # each (R, 128)

    # Fully unrolled VPU multiply-add on dense (R, 128) planes.
    for co in range(c_out):
        acc = x_planes[0] * w_ref[co, 0]
        for ci in range(1, c_in):
            acc = acc + x_planes[ci] * w_ref[co, ci]
        o_ref[0, co] = (acc + b_ref[co]).astype(o_ref.dtype)


# ------------------------------- wrapper -------------------------------------
def outconv_pallas(x_nchw, weight, bias, u, *, eps=1e-12):
    """1x1 conv with spectral-normalized weight.

    x_nchw : (N, C_in, H, W) float32
    weight : (C_out, C_in, 1, 1) float32   (raw parameter, un-normalized)
    bias   : (C_out,) float32
    u      : (C_out,) float32  spectral-norm power-iteration vector
    """
    N, C_in, H, W = x_nchw.shape
    C_out = weight.shape[0]
    HW = H * W

    # ---- spectral norm (matches torch.nn.utils.spectral_norm, 1 power iter) ----
    # TODO(synk): torch updates u in-place across forward calls; callers must
    # thread u_new externally for iteration-to-iteration parity.
    w_mat = weight.reshape(C_out, C_in)
    v = w_mat.T @ u
    v = v / jnp.maximum(jnp.linalg.norm(v), eps)          # F.normalize semantics
    u_new = w_mat @ v
    u_new = u_new / jnp.maximum(jnp.linalg.norm(u_new), eps)
    sigma = u_new @ (w_mat @ v)
    w_sn = (w_mat / sigma).astype(jnp.float32)            # (C_out, C_in)
    b = bias.astype(jnp.float32)                          # (C_out,)

    # ---- pixel re-layout: (N, C_in, rows, 128); pixels fill sublanes + lanes ----
    R_TARGET = 1024                       # 1024 rows * 128 px * 4 B = 512 KiB/plane
    rows0 = -(-HW // 128)                 # ceil(HW / 128)
    if rows0 <= R_TARGET:
        tile_rows = rows0                 # block == full rows dim (no 8-align needed)
        rows_pad = rows0
    else:
        tile_rows = R_TARGET              # multiple of 8
        rows_pad = -(-rows0 // R_TARGET) * R_TARGET
    HW_pad = rows_pad * 128

    x_flat = x_nchw.reshape(N, C_in, HW)
    if HW_pad != HW:
        x_flat = jnp.pad(x_flat, ((0, 0), (0, 0), (0, HW_pad - HW)))
    x4 = x_flat.reshape(N, C_in, rows_pad, 128)

    grid = (N, rows_pad // tile_rows)     # both axes data-parallel (megacore on v7x)

    itemsize = jnp.dtype(x_nchw.dtype).itemsize
    cost = pl.CostEstimate(
        flops=2 * N * HW * C_in * C_out,
        transcendentals=0,
        bytes_accessed=int((N * HW_pad * (C_in + C_out) + C_in * C_out + C_out)
                           * itemsize),
    )

    out4 = pl.pallas_call(
        _outconv_kernel,
        out_shape=jax.ShapeDtypeStruct((N, C_out, rows_pad, 128), x_nchw.dtype),
        grid=grid,
        in_specs=[
            # Tiny invariant operands stay resident in SMEM (scalar reads).
            pl.BlockSpec(memory_space=pltpu.MemorySpace.SMEM),   # w_sn (C_out, C_in)
            pl.BlockSpec(memory_space=pltpu.MemorySpace.SMEM),   # bias (C_out,)
            pl.BlockSpec((1, C_in, tile_rows, 128), lambda n, t: (n, 0, t, 0)),
        ],
        out_specs=pl.BlockSpec((1, C_out, tile_rows, 128), lambda n, t: (n, 0, t, 0)),
        compiler_params=pltpu.CompilerParams(
            dimension_semantics=("parallel", "parallel")),
        cost_estimate=cost,
    )(w_sn, b, x4)

    # strip pixel padding, back to NCHW
    out = out4.reshape(N, C_out, HW_pad)[:, :, :HW].reshape(N, C_out, H, W)
    return out


# ------------------------------- reference ----------------------------------
def outconv_ref(x_nchw, weight, bias, u, eps=1e-12):
    C_out, C_in = weight.shape[0], weight.shape[1]
    w_mat = weight.reshape(C_out, C_in)
    v = w_mat.T @ u
    v = v / jnp.maximum(jnp.linalg.norm(v), eps)
    u_new = w_mat @ v
    u_new = u_new / jnp.maximum(jnp.linalg.norm(u_new), eps)
    sigma = u_new @ (w_mat @ v)
    w_sn = w_mat / sigma
    y = jnp.einsum("nchw,oc->nohw", x_nchw, w_sn) + bias[None, :, None, None]
    return y


# --------------------------------- main --------------------------------------
if __name__ == "__main__":
    key = jax.random.PRNGKey(0)
    k_x, k_w, k_b, k_u = jax.random.split(key, 4)

    N, C_in, H, W = 2, 4, 16, 16
    C_out = 3

    x = jax.random.normal(k_x, (N, C_in, H, W), dtype=jnp.float32)
    # Deterministic parameter init (synthetic; shapes from nn.Conv2d(C_in, C_out, 1))
    weight = jax.random.normal(k_w, (C_out, C_in, 1, 1), dtype=jnp.float32) * 0.1
    bias = jax.random.normal(k_b, (C_out,), dtype=jnp.float32) * 0.1
    # spectral_norm's power-iteration vector u (normalized random, as in torch)
    u = jax.random.normal(k_u, (C_out,), dtype=jnp.float32)
    u = u / jnp.maximum(jnp.linalg.norm(u), 1e-12)

    # One jit over spectral-norm glue + pallas_call so the tiny matvec/norm HLOs
    # fuse instead of dispatching separately.
    outconv_jit = jax.jit(outconv_pallas)

    y = outconv_jit(x, weight, bias, u)
    y = jax.block_until_ready(y)

    y_ref = outconv_ref(x, weight, bias, u)
    assert y.shape == (N, C_out, H, W), y.shape
    assert jnp.allclose(y, y_ref, atol=1e-5, rtol=1e-5), \
        float(jnp.max(jnp.abs(y - y_ref)))

    print("KERNEL_OK")
</pallas_src>

<mosaic_0001>
module attributes {stable_mosaic.version = 11 : i64} {
  func.func @_outconv_kernel(%arg0: i32, %arg1: i32, %arg2: memref<3x4xf32, #tpu.memory_space<smem>>, %arg3: memref<3xf32, #tpu.memory_space<smem>>, %arg4: memref<1x4x2x128xf32, #tpu.memory_space<vmem>>, %arg5: memref<1x3x2x128xf32, #tpu.memory_space<vmem>>) attributes {dimension_semantics = [#tpu.dimension_semantics<parallel>, #tpu.dimension_semantics<parallel>], iteration_bounds = array<i64: 2, 1>, scalar_prefetch = 0 : i64, scratch_operands = 0 : i64, tpu.core_type = #tpu.core_type<tc>, window_params = [{transform_indices = @transform_0, window_bounds = array<i64: 3, 4>}, {transform_indices = @transform_1, window_bounds = array<i64: 3>}, {transform_indices = @transform_2, window_bounds = array<i64: 1, 4, 2, 128>}, {transform_indices = @transform_3, window_bounds = array<i64: 1, 3, 2, 128>}]} {
    %c0 = arith.constant 0 : index
    %c0_0 = arith.constant 0 : index
    %c0_1 = arith.constant 0 : index
    %c0_2 = arith.constant 0 : index
    %0 = vector.load %arg4[%c0, %c0_0, %c0_1, %c0_2] : memref<1x4x2x128xf32, #tpu.memory_space<vmem>>, vector<1x1x2x128xf32>
    %1 = vector.shape_cast %0 : vector<1x1x2x128xf32> to vector<2x128xf32>
    %c0_3 = arith.constant 0 : index
    %c1 = arith.constant 1 : index
    %c0_4 = arith.constant 0 : index
    %c0_5 = arith.constant 0 : index
    %2 = vector.load %arg4[%c0_3, %c1, %c0_4, %c0_5] : memref<1x4x2x128xf32, #tpu.memory_space<vmem>>, vector<1x1x2x128xf32>
    %3 = vector.shape_cast %2 : vector<1x1x2x128xf32> to vector<2x128xf32>
    %c0_6 = arith.constant 0 : index
    %c2 = arith.constant 2 : index
    %c0_7 = arith.constant 0 : index
    %c0_8 = arith.constant 0 : index
    %4 = vector.load %arg4[%c0_6, %c2, %c0_7, %c0_8] : memref<1x4x2x128xf32, #tpu.memory_space<vmem>>, vector<1x1x2x128xf32>
    %5 = vector.shape_cast %4 : vector<1x1x2x128xf32> to vector<2x128xf32>
    %c0_9 = arith.constant 0 : index
    %c3 = arith.constant 3 : index
    %c0_10 = arith.constant 0 : index
    %c0_11 = arith.constant 0 : index
    %6 = vector.load %arg4[%c0_9, %c3, %c0_10, %c0_11] : memref<1x4x2x128xf32, #tpu.memory_space<vmem>>, vector<1x1x2x128xf32>
    %7 = vector.shape_cast %6 : vector<1x1x2x128xf32> to vector<2x128xf32>
    %c0_12 = arith.constant 0 : index
    %c0_13 = arith.constant 0 : index
    %8 = memref.load %arg2[%c0_12, %c0_13] : memref<3x4xf32, #tpu.memory_space<smem>>
    %9 = vector.broadcast %8 : f32 to vector<2x128xf32>
    %10 = arith.mulf %1, %9 : vector<2x128xf32>
    %c0_14 = arith.constant 0 : index
    %c1_15 = arith.constant 1 : index
    %11 = memref.load %arg2[%c0_14, %c1_15] : memref<3x4xf32, #tpu.memory_space<smem>>
    %12 = vector.broadcast %11 : f32 to vector<2x128xf32>
    %13 = arith.mulf %3, %12 : vector<2x128xf32>
    %14 = arith.addf %10, %13 : vector<2x128xf32>
    %c0_16 = arith.constant 0 : index
    %c2_17 = arith.constant 2 : index
    %15 = memref.load %arg2[%c0_16, %c2_17] : memref<3x4xf32, #tpu.memory_space<smem>>
    %16 = vector.broadcast %15 : f32 to vector<2x128xf32>
    %17 = arith.mulf %5, %16 : vector<2x128xf32>
    %18 = arith.addf %14, %17 : vector<2x128xf32>
    %c0_18 = arith.constant 0 : index
    %c3_19 = arith.constant 3 : index
    %19 = memref.load %arg2[%c0_18, %c3_19] : memref<3x4xf32, #tpu.memory_space<smem>>
    %20 = vector.broadcast %19 : f32 to vector<2x128xf32>
    %21 = arith.mulf %7, %20 : vector<2x128xf32>
    %22 = arith.addf %18, %21 : vector<2x128xf32>
    %c0_20 = arith.constant 0 : index
    %23 = memref.load %arg3[%c0_20] : memref<3xf32, #tpu.memory_space<smem>>
    %24 = vector.broadcast %23 : f32 to vector<2x128xf32>
    %25 = arith.addf %22, %24 : vector<2x128xf32>
    %c0_21 = arith.constant 0 : index
    %c0_22 = arith.constant 0 : index
    %c0_23 = arith.constant 0 : index
    %c0_24 = arith.constant 0 : index
    %26 = vector.load %arg5[%c0_21, %c0_22, %c0_23, %c0_24] : memref<1x3x2x128xf32, #tpu.memory_space<vmem>>, vector<1x1x2x128xf32>
    %27 = vector.shape_cast %26 : vector<1x1x2x128xf32> to vector<2x128xf32>
    %28 = vector.shape_cast %25 : vector<2x128xf32> to vector<1x1x2x128xf32>
    tpu.vector_store %arg5[%c0_21, %c0_22, %c0_23, %c0_24], %28 {strides = array<i32>} : memref<1x3x2x128xf32, #tpu.memory_space<vmem>>, vector<1x1x2x128xf32>,
    %c1_25 = arith.constant 1 : index
    %c0_26 = arith.constant 0 : index
    %29 = memref.load %arg2[%c1_25, %c0_26] : memref<3x4xf32, #tpu.memory_space<smem>>
    %30 = vector.broadcast %29 : f32 to vector<2x128xf32>
    %31 = arith.mulf %1, %30 : vector<2x128xf32>
    %c1_27 = arith.constant 1 : index
    %c1_28 = arith.constant 1 : index
    %32 = memref.load %arg2[%c1_27, %c1_28] : memref<3x4xf32, #tpu.memory_space<smem>>
    %33 = vector.broadcast %32 : f32 to vector<2x128xf32>
    %34 = arith.mulf %3, %33 : vector<2x128xf32>
    %35 = arith.addf %31, %34 : vector<2x128xf32>
    %c1_29 = arith.constant 1 : index
    %c2_30 = arith.constant 2 : index
    %36 = memref.load %arg2[%c1_29, %c2_30] : memref<3x4xf32, #tpu.memory_space<smem>>
    %37 = vector.broadcast %36 : f32 to vector<2x128xf32>
    %38 = arith.mulf %5, %37 : vector<2x128xf32>
    %39 = arith.addf %35, %38 : vector<2x128xf32>
    %c1_31 = arith.constant 1 : index
    %c3_32 = arith.constant 3 : index
    %40 = memref.load %arg2[%c1_31, %c3_32] : memref<3x4xf32, #tpu.memory_space<smem>>
    %41 = vector.broadcast %40 : f32 to vector<2x128xf32>
    %42 = arith.mulf %7, %41 : vector<2x128xf32>
    %43 = arith.addf %39, %42 : vector<2x128xf32>
    %c1_33 = arith.constant 1 : index
    %44 = memref.load %arg3[%c1_33] : memref<3xf32, #tpu.memory_space<smem>>
    %45 = vector.broadcast %44 : f32 to vector<2x128xf32>
    %46 = arith.addf %43, %45 : vector<2x128xf32>
    %c0_34 = arith.constant 0 : index
    %c1_35 = arith.constant 1 : index
    %c0_36 = arith.constant 0 : index
    %c0_37 = arith.constant 0 : index
    %47 = vector.load %arg5[%c0_34, %c1_35, %c0_36, %c0_37] : memref<1x3x2x128xf32, #tpu.memory_space<vmem>>, vector<1x1x2x128xf32>
    %48 = vector.shape_cast %47 : vector<1x1x2x128xf32> to vector<2x128xf32>
    %49 = vector.shape_cast %46 : vector<2x128xf32> to vector<1x1x2x128xf32>
    tpu.vector_store %arg5[%c0_34, %c1_35, %c0_36, %c0_37], %49 {strides = array<i32>} : memref<1x3x2x128xf32, #tpu.memory_space<vmem>>, vector<1x1x2x128xf32>,
    %c2_38 = arith.constant 2 : index
    %c0_39 = arith.constant 0 : index
    %50 = memref.load %arg2[%c2_38, %c0_39] : memref<3x4xf32, #tpu.memory_space<smem>>
    %51 = vector.broadcast %50 : f32 to vector<2x128xf32>
    %52 = arith.mulf %1, %51 : vector<2x128xf32>
    %c2_40 = arith.constant 2 : index
    %c1_41 = arith.constant 1 : index
    %53 = memref.load %arg2[%c2_40, %c1_41] : memref<3x4xf32, #tpu.memory_space<smem>>
    %54 = vector.broadcast %53 : f32 to vector<2x128xf32>
    %55 = arith.mulf %3, %54 : vector<2x128xf32>
    %56 = arith.addf %52, %55 : vector<2x128xf32>
    %c2_42 = arith.constant 2 : index
    %c2_43 = arith.constant 2 : index
    %57 = memref.load %arg2[%c2_42, %c2_43] : memref<3x4xf32, #tpu.memory_space<smem>>
    %58 = vector.broadcast %57 : f32 to vector<2x128xf32>
    %59 = arith.mulf %5, %58 : vector<2x128xf32>
    %60 = arith.addf %56, %59 : vector<2x128xf32>
    %c2_44 = arith.constant 2 : index
    %c3_45 = arith.constant 3 : index
    %61 = memref.load %arg2[%c2_44, %c3_45] : memref<3x4xf32, #tpu.memory_space<smem>>
    %62 = vector.broadcast %61 : f32 to vector<2x128xf32>
    %63 = arith.mulf %7, %62 : vector<2x128xf32>
    %64 = arith.addf %60, %63 : vector<2x128xf32>
    %c2_46 = arith.constant 2 : index
    %65 = memref.load %arg3[%c2_46] : memref<3xf32, #tpu.memory_space<smem>>
    %66 = vector.broadcast %65 : f32 to vector<2x128xf32>
    %67 = arith.addf %64, %66 : vector<2x128xf32>
    %c0_47 = arith.constant 0 : index
    %c2_48 = arith.constant 2 : index
    %c0_49 = arith.constant 0 : index
    %c0_50 = arith.constant 0 : index
    %68 = vector.load %arg5[%c0_47, %c2_48, %c0_49, %c0_50] : memref<1x3x2x128xf32, #tpu.memory_space<vmem>>, vector<1x1x2x128xf32>
    %69 = vector.shape_cast %68 : vector<1x1x2x128xf32> to vector<2x128xf32>
    %70 = vector.shape_cast %67 : vector<2x128xf32> to vector<1x1x2x128xf32>
    tpu.vector_store %arg5[%c0_47, %c2_48, %c0_49, %c0_50], %70 {strides = array<i32>} : memref<1x3x2x128xf32, #tpu.memory_space<vmem>>, vector<1x1x2x128xf32>,
    return
  }
  func.func @transform_0(%arg0: i32, %arg1: i32) -> (i32, i32) {
    %c0_i32 = arith.constant 0 : i32
    %c0_i32_0 = arith.constant 0 : i32
    %c0_i32_1 = arith.constant 0 : i32
    return %c0_i32, %c0_i32_0 : i32, i32
  }
  func.func @transform_1(%arg0: i32, %arg1: i32) -> i32 {
    %c0_i32 = arith.constant 0 : i32
    %c0_i32_0 = arith.constant 0 : i32
    return %c0_i32 : i32
  }
  func.func @transform_2(%arg0: i32, %arg1: i32) -> (i32, i32, i32, i32) {
    %c0_i32 = arith.constant 0 : i32
    %c0_i32_0 = arith.constant 0 : i32
    %c0_i32_1 = arith.constant 0 : i32
    return %arg0, %c0_i32, %arg1, %c0_i32_0 : i32, i32, i32, i32
  }
  func.func @transform_3(%arg0: i32, %arg1: i32) -> (i32, i32, i32, i32) {
    %c0_i32 = arith.constant 0 : i32
    %c0_i32_0 = arith.constant 0 : i32
    %c0_i32_1 = arith.constant 0 : i32
    return %arg0, %c0_i32, %arg1, %c0_i32_0 : i32, i32, i32, i32
  }
}

</mosaic_0001>

<bundles_post_ra>
// kernel: outconv_pallas.1
= control target key start
LH: loop header
LB: loop body
LE: loop exit
PB: predicated region body
PF: predicated region fallthrough
CT: control target
= control target key end

     0   :  { %8 = vsyncpa [#allocation3], 0  ;;  %s634_s0 = inlined_call_operand.vmem [shape: f32[3,4], index: 0, kind: input, shape index: {}]   ;;  %s635_s1 = inlined_call_operand.vmem [shape: f32[3], index: 1, kind: input, shape index: {}]   ;;  %s636_s2 = inlined_call_operand.vmem [shape: f32[2,4,2,128], index: 2, kind: input, shape index: {}]   ;;  %s637_s3 = inlined_call_operand.vmem [shape: f32[2,3,2,128], index: 3, kind: output, shape index: {}]  }
   0x1   :  { %9 = vsyncpa [#allocation5], 0  ;;  %s564_s12 = smov 0   ;;  %s566_s13 = smov 0  }
   0x2   :  { %s568_s14 = smov 0  }
   0x3 LB: > { %s401_s15 = sadd.s32 4294967295, %s540_s14   ;;  %s27_s16 = sadd.s32 1, %s536_s13  ;;  %s540_s14 = sphi %s568_s14, %s15_s14   ;;  %s536_s13 = sphi %s566_s13, %s640_s13   ;;  %s532_s12 = sphi %s564_s12, %s639_s12  }
   0x4   : > { %p29_p0 = scmp.ge.s32.totalorder %s27_s16, 2  ;;  %p403_p1 = scmp.ge.s32.totalorder %s540_s14, 1 }
   0x5   : > { %p130_p2 = scmp.lt.s32.totalorder %s540_s14, 3  ;;  %p585_p4 = scmp.eq.s32.totalorder %s401_s15, 0 }
   0x6   : > { %s642_s16 = smov (%p29_p0, %s27_s16), 0  ;;  %s142_s20 = sshll.u32 %s634_s0, 4  ;;  %s143_s20 = int_to_ptr.vmem [resolvable:$true] %s142_s20 }
   0x7   : > { %p131_p3 = pnand %p403_p1, %p130_p2  ;;  %s152_s23 = sshll.u32 %s635_s1, 4  ;;  %s153_s23 = int_to_ptr.vmem [resolvable:$true] %s152_s23 }
   0x8   : > { %s542_s24 = smov [#allocation2]   ;;  %s543_s25 = smov [#allocation4]  }
   0x9   : > { %p443_p5 = pneg %p131_p3 }
   0xa   : > { %176 = sbr.rel (%p131_p3) target bundleno = 50 (0x32), region = 32 }
   0xb   : > { %p444_p6 = pnand %p585_p4, %p443_p5 }
   0xd   : > { %446 = dma.vmem_to_smem (!%p444_p6), %s143_s20, 64, %s542_s24, [#allocation3]  }
   0xe   : > { %449 = dma.vmem_to_smem (!%p444_p6), %s153_s23, 16, %s543_s25, [#allocation5]  }
   0xf   : > { %523 = dma.done.wait (%p585_p4), [#allocation3], 64  }
  0x10   : > { %525 = vsyncadd (%p585_p4), [#allocation3], 4294967232 }
  0x11   : > { %527 = dma.done.wait (%p585_p4), [#allocation5], 16  }
  0x12   : > { %529 = vsyncadd (%p585_p4), [#allocation5], 4294967280 }
  0x13   : > { %188 = sfence }
  0x14   : > { %p213_p7 = scmp.lt.s32.totalorder %s532_s12, 1  ;;  %s236_s26 = sld [smem:[#allocation2]] }
  0x15   : > { %s416_s27 = sld [smem:[#allocation2 + $0x1]] }
  0x16   : > { %s644_s12 = smov (!%p213_p7, %s532_s12), 1  ;;  %s417_s28 = sld [smem:[#allocation2 + $0x2]] }
  0x17   : > { %s433_s29 = sshll.u32 %s644_s12, 3  ;;  %s418_s6 = sld [smem:[#allocation2 + $0x3]] }
  0x18   : > { %s220_s5 = scalar_lea.vmem %s636_s2, %s433_s29  ;;  %s251_s7 = sld [smem:[#allocation4]] }
  0x19   : > { %v229_v0 = vld [vmem:[%s220_s5] sm:$0x3]  ;;  %v413_v1 = vld [vmem:[%s220_s5 + $0x2] sm:$0x3]  ;;  %v414_v3 = vld [vmem:[%s220_s5 + $0x4] sm:$0x3] }
  0x1a   : > { %v237_v2 = vstv %s236_s26  ;;  %s419_s8 = sld [smem:[#allocation2 + $0x80]]  ;;  %v415_v7 = vld [vmem:[%s220_s5 + $0x6] sm:$0x3]  ;;  %s434_s11 = smul.u32 6, %s644_s12 }
  0x1b   : > { %v238_v4 = vmul.f32 %v237_v2, %v229_v0  ;;  %v240_v5 = vstv %s416_s27  ;;  %s420_s9 = sld [smem:[#allocation2 + $0x81]] }
  0x1c   : > { %v241_v6 = vmul.f32 %v413_v1, %v240_v5  ;;  %v244_v8 = vstv %s417_s28  ;;  %s421_s10 = sld [smem:[#allocation2 + $0x82]]  ;;  %s619_s22 = scalar_lea.vmem %s637_s3, %s434_s11 }
  0x1d   : > { %v245_v10 = vmul.f32 %v414_v3, %v244_v8  ;;  %v248_v11 = vstv %s418_s6  ;;  %s422_s15 = sld [smem:[#allocation2 + $0x83]] }
  0x1e   : > { %v242_v9 = vadd.f32 %v241_v6, %v238_v4  ;;  %v249_v13 = vmul.f32 %v415_v7, %v248_v11  ;;  %s614_s17 = sld [smem:[#allocation4 + $0x1]]  ;;  %v252_v14 = vstv %s251_s7 }
  0x1f   : > { %s425_s18 = sld [smem:[#allocation2 + $0x100]] }
  0x20   : > { %v246_v12 = vadd.f32 %v245_v10, %v242_v9  ;;  %v256_v16 = vstv %s419_s8  ;;  %s426_s19 = sld [smem:[#allocation2 + $0x101]] }
  0x21   : > { %v257_v17 = vmul.f32 %v256_v16, %v229_v0  ;;  %v259_v18 = vstv %s420_s9  ;;  %s427_s12 = sld [smem:[#allocation2 + $0x102]] }
  0x22   : > { %v250_v15 = vadd.f32 %v249_v13, %v246_v12  ;;  %v260_v20 = vmul.f32 %v413_v1, %v259_v18  ;;  %v263_v21 = vstv %s421_s10  ;;  %s428_s23 = sld [smem:[#allocation2 + $0x103]] }
  0x23   : > { %v264_v22 = vmul.f32 %v414_v3, %v263_v21  ;;  %v267_v23 = vstv %s422_s15  ;;  %s429_s24 = sld [smem:[#allocation4 + $0x2]] }
  0x24   : > { %v253_v19 = vadd.f32 %v252_v14, %v250_v15  ;;  %v261_v24 = vadd.f32 %v260_v20, %v257_v17  ;;  %v268_v25 = vmul.f32 %v415_v7, %v267_v23  ;;  %v271_v30 = vstv %s614_s17 }
  0x25   : > { %v276_v26 = vstv %s425_s18 }
  0x26   : > { %254 = vst [vmem:[%s619_s22] sm:$0x3] %v253_v19  ;;  %v265_v27 = vadd.f32 %v264_v22, %v261_v24  ;;  %v277_v28 = vmul.f32 %v276_v26, %v229_v0  ;;  %v279_v29 = vstv %s426_s19 }
  0x27   : > { %v280_v31 = vmul.f32 %v413_v1, %v279_v29  ;;  %v283_v32 = vstv %s427_s12 }
  0x28   : > { %v269_v33 = vadd.f32 %v268_v25, %v265_v27  ;;  %v284_v34 = vmul.f32 %v414_v3, %v283_v32  ;;  %v287_v35 = vstv %s428_s23 }
  0x29   : > { %v281_v36 = vadd.f32 %v280_v31, %v277_v28  ;;  %v288_v37 = vmul.f32 %v415_v7, %v287_v35  ;;  %v291_v40 = vstv %s429_s24 }
  0x2a   : > { %v272_v38 = vadd.f32 %v271_v30, %v269_v33 }
  0x2b   : > { %v285_v39 = vadd.f32 %v284_v34, %v281_v36 }
  0x2c   : > { %424 = vst [vmem:[%s619_s22 + $0x2] sm:$0x3] %v272_v38 }
  0x2d   : > { %v289_v41 = vadd.f32 %v288_v37, %v285_v39 }
  0x2f   : > { %v292_v42 = vadd.f32 %v291_v40, %v289_v41 }
  0x31   : > { %430 = vst [vmem:[%s619_s22 + $0x4] sm:$0x3] %v292_v42 }
  0x32 PF: > { %s15_s14 = sadd.s32 1, %s540_s14   ;;  %s639_s12 = smov %s536_s13 }
  0x33   : > { %p12_p8 = scmp.ge.s32.totalorder %s15_s14, 4   ;;  %s640_s13 = smov %s642_s16 }
  0x35   :  { %14 = sbr.rel (!%p12_p8) target bundleno = 3 (0x3), region = 76 }
  0x3a   :  { %322 = vsyncpa [#allocation3], 1 }
  0x3b   :  { %324 = vsyncpa [#allocation3 + $0x1], 1 }
  0x3c   :  { %325 = vsyncpa [#allocation5], 1 }

</bundles_post_ra>
